<compile_context>
chip_gen: v5e
topology: v5e:2x2
jax: 0.10.0
libtpu: 0.0.40
codegen_flags: <defaults>
</compile_context>

<pallas_src>
import functools

import numpy as np
import jax
import jax.numpy as jnp
from jax.experimental import pallas as pl
from jax.experimental.pallas import tpu as pltpu

_LANE = 128
# 8192 sublanes * 128 lanes * 4 B = 4 MiB per f32 input block.  Two input
# streams, double-buffered -> 16 MiB of pipeline buffers plus in-kernel f32
# temporaries; covered by the explicit 48 MiB scoped-VMEM limit below.
_TARGET_SUBLANES = 8192
_VMEM_LIMIT_BYTES = 48 * 1024 * 1024


def _tensorcores_per_chip():
    """Best-effort detection of 2-TC (megacore) chips; default to 1."""
    try:
        kind = jax.devices()[0].device_kind.lower()
    except Exception:
        return 1
    return 2 if "v7" in kind else 1


def _sublane_multiple(dtype):
    itemsize = jnp.dtype(dtype).itemsize
    if itemsize >= 4:
        return 8
    if itemsize == 2:
        return 16
    return 32


def _largest_divisor_leq(n, cap):
    cap = max(1, min(n, cap))
    for t in range(cap, 0, -1):
        if n % t == 0:
            return t
    return 1


def _choose_tiling(n, d, sublane_mult, two_cores):
    """Pick (d_pad, r, tr, bn) for the (N, R, 128) lane-dense layout."""
    sm = sublane_mult
    d_pad = -(-d // _LANE) * _LANE
    r = d_pad // _LANE
    if r > _TARGET_SUBLANES and r % sm != 0:
        # The reduction axis will be tiled; round it to the dtype's minimum
        # sublane multiple so every tile satisfies the tiling constraint.
        r = -(-r // sm) * sm
        d_pad = r * _LANE

    if r <= _TARGET_SUBLANES:
        tr = r                      # whole per-sample row fits the budget
    else:
        tr = max(t for t in range(sm, _TARGET_SUBLANES + 1, sm) if r % t == 0)

    if tr < r:
        bn = 1
    else:
        bn_cap = max(1, _TARGET_SUBLANES // r)
        if two_cores and n >= 2:
            # Only on real 2-TC chips (v7x): keep >= 2 batch tiles so the
            # "parallel" axis can be sharded across TensorCores.
            bn_cap = min(bn_cap, max(1, n // 2))
        bn = _largest_divisor_leq(n, bn_cap)
    return d_pad, r, tr, bn


def _sigmoid_f32(v):
    # One EUP transcendental (tanh) instead of exp + reciprocal.
    x = v.astype(jnp.float32)
    return 0.5 * jnp.tanh(0.5 * x) + 0.5


def _dice_kernel_fused(x_ref, t_ref, dice_ref, *, union_correction):
    """gr == 1 fast path: whole per-sample row in one block, no scratch."""
    x = _sigmoid_f32(x_ref[...])                    # (BN, R, 128) f32
    t = t_ref[...].astype(jnp.float32)

    inter = jnp.sum(jnp.sum(x * t, axis=1), axis=-1, keepdims=True)   # (BN, 1)
    union = jnp.sum(jnp.sum(x + t, axis=1), axis=-1, keepdims=True)   # (BN, 1)
    if union_correction != 0.0:
        # sigmoid(0) = 0.5 contribution of zero-padded tail elements of x.
        union = union - jnp.float32(union_correction)
    dice = 2.0 * inter / (union + jnp.float32(1e-8))                  # (BN, 1)
    # Lane-dense store of the per-sample dice scores.
    dice_ref[...] = jnp.broadcast_to(dice[None, :, :], dice_ref.shape)


def _dice_kernel_tiled(x_ref, t_ref, dice_ref, inter_ref, union_ref,
                       *, union_correction):
    """gr > 1: reduction axis tiled; lane-vector partials live in VMEM."""
    j = pl.program_id(1)

    @pl.when(j == 0)
    def _init():
        inter_ref[...] = jnp.zeros_like(inter_ref)
        union_ref[...] = jnp.zeros_like(union_ref)

    x = _sigmoid_f32(x_ref[...])                    # (BN, TR, 128) f32
    t = t_ref[...].astype(jnp.float32)

    # Reduce only the sublane (TR) axis per step; the cross-lane reduce is
    # deferred to the final reduction tile.
    inter_ref[...] += jnp.sum(x * t, axis=1)        # (BN, 128)
    union_ref[...] += jnp.sum(x + t, axis=1)        # (BN, 128)

    @pl.when(j == pl.num_programs(1) - 1)
    def _finalize():
        inter = jnp.sum(inter_ref[...], axis=1, keepdims=True)   # (BN, 1)
        union = jnp.sum(union_ref[...], axis=1, keepdims=True)   # (BN, 1)
        if union_correction != 0.0:
            union = union - jnp.float32(union_correction)
        dice = 2.0 * inter / (union + jnp.float32(1e-8))          # (BN, 1)
        dice_ref[...] = jnp.broadcast_to(dice[None, :, :], dice_ref.shape)


def dice_loss_pallas(inputs, targets):
    """Pallas implementation of DiceLoss.forward(inputs, targets)."""
    assert inputs.shape == targets.shape
    n = inputs.shape[0]
    d = int(np.prod(inputs.shape[1:]))

    sm = max(_sublane_multiple(inputs.dtype), _sublane_multiple(targets.dtype))
    two_cores = _tensorcores_per_chip() >= 2
    d_pad, r, tr, bn = _choose_tiling(n, d, sm, two_cores)
    gn = n // bn
    gr = r // tr

    # No dtype cast here (done in-kernel); reshape is layout-preserving.
    x = inputs.reshape(n, d)
    t = targets.reshape(n, d)
    if d_pad != d:
        # Only when D is not 128-aligned (one extra HBM pass).  Targets pad
        # with zeros so inter and sum(t) stay exact; the x padding is
        # corrected in-kernel via union_correction.
        x = jnp.pad(x, ((0, 0), (0, d_pad - d)))
        t = jnp.pad(t, ((0, 0), (0, d_pad - d)))
    x3 = x.reshape(n, r, _LANE)
    t3 = t.reshape(n, r, _LANE)

    union_correction = 0.5 * float(d_pad - d)
    in_bytes = n * d * (jnp.dtype(inputs.dtype).itemsize
                        + jnp.dtype(targets.dtype).itemsize)
    cost = pl.CostEstimate(
        flops=int(4 * n * d),
        transcendentals=int(n * d),
        bytes_accessed=int(in_bytes + gn * bn * _LANE * 4),
    )

    if gr == 1:
        kernel = functools.partial(_dice_kernel_fused,
                                   union_correction=union_correction)
        grid_spec = pltpu.PrefetchScalarGridSpec(
            num_scalar_prefetch=0,
            grid=(gn,),
            in_specs=[
                pl.BlockSpec((bn, r, _LANE), lambda i: (i, 0, 0)),
                pl.BlockSpec((bn, r, _LANE), lambda i: (i, 0, 0)),
            ],
            out_specs=pl.BlockSpec((1, bn, _LANE), lambda i: (i, 0, 0)),
        )
        dim_sem = ("parallel",)
    else:
        kernel = functools.partial(_dice_kernel_tiled,
                                   union_correction=union_correction)
        grid_spec = pltpu.PrefetchScalarGridSpec(
            num_scalar_prefetch=0,
            grid=(gn, gr),
            in_specs=[
                pl.BlockSpec((bn, tr, _LANE), lambda i, j: (i, j, 0)),
                pl.BlockSpec((bn, tr, _LANE), lambda i, j: (i, j, 0)),
            ],
            out_specs=pl.BlockSpec((1, bn, _LANE), lambda i, j: (i, 0, 0)),
            scratch_shapes=[
                pltpu.VMEM((bn, _LANE), jnp.float32),   # inter partials
                pltpu.VMEM((bn, _LANE), jnp.float32),   # union partials
            ],
        )
        dim_sem = ("parallel", "arbitrary")

    dice_tiles = pl.pallas_call(
        kernel,
        out_shape=jax.ShapeDtypeStruct((gn, bn, _LANE), jnp.float32),
        grid_spec=grid_spec,
        compiler_params=pltpu.CompilerParams(
            dimension_semantics=dim_sem,
            vmem_limit_bytes=_VMEM_LIMIT_BYTES,
        ),
        cost_estimate=cost,
    )(x3, t3)

    dice = dice_tiles.reshape(gn * bn, _LANE)[:n, 0]
    return 1.0 - jnp.mean(dice)


def dice_loss_ref(inputs, targets):
    """Pure-JAX reference matching the PyTorch semantics exactly."""
    n = inputs.shape[0]
    x = jax.nn.sigmoid(inputs).reshape(n, -1)
    t = targets.reshape(n, -1)
    inter = jnp.sum(x * t, axis=1)
    union = jnp.sum(x, axis=1) + jnp.sum(t, axis=1)
    dice = 2.0 * inter / (union + 1e-8)
    return 1.0 - jnp.mean(dice)


if __name__ == "__main__":
    key = jax.random.PRNGKey(0)
    k1, k2 = jax.random.split(key)

    # NCHW segmentation logits / binary mask pair.
    inputs = jax.random.normal(k1, (2, 4, 16, 16), dtype=jnp.float32)
    targets = (jax.random.uniform(k2, (2, 4, 16, 16)) > 0.5).astype(jnp.float32)

    loss = dice_loss_pallas(inputs, targets)
    jax.block_until_ready(loss)

    ref = dice_loss_ref(inputs, targets)
    np.testing.assert_allclose(np.asarray(loss), np.asarray(ref),
                               rtol=1e-5, atol=1e-5)
    print("KERNEL_OK")
</pallas_src>

<mosaic_0001>
module attributes {stable_mosaic.version = 11 : i64} {
  func.func @_dice_kernel_fused(%arg0: i32, %arg1: memref<2x8x128xf32, #tpu.memory_space<vmem>>, %arg2: memref<2x8x128xf32, #tpu.memory_space<vmem>>, %arg3: memref<1x2x128xf32, #tpu.memory_space<vmem>>) attributes {dimension_semantics = [#tpu.dimension_semantics<parallel>], iteration_bounds = array<i64: 1>, scalar_prefetch = 0 : i64, scratch_operands = 0 : i64, tpu.core_type = #tpu.core_type<tc>, window_params = [{transform_indices = @transform_0, window_bounds = array<i64: 2, 8, 128>}, {transform_indices = @transform_1, window_bounds = array<i64: 2, 8, 128>}, {transform_indices = @transform_2, window_bounds = array<i64: 1, 2, 128>}]} {
    %c0 = arith.constant 0 : index
    %c0_0 = arith.constant 0 : index
    %c0_1 = arith.constant 0 : index
    %0 = vector.load %arg1[%c0, %c0_0, %c0_1] : memref<2x8x128xf32, #tpu.memory_space<vmem>>, vector<2x8x128xf32>
    %cst = arith.constant 5.000000e-01 : f32
    %1 = vector.broadcast %cst : f32 to vector<2x8x128xf32>
    %2 = arith.mulf %1, %0 : vector<2x8x128xf32>
    %3 = math.tanh %2 : vector<2x8x128xf32>
    %cst_2 = arith.constant 5.000000e-01 : f32
    %4 = vector.broadcast %cst_2 : f32 to vector<2x8x128xf32>
    %5 = arith.mulf %4, %3 : vector<2x8x128xf32>
    %cst_3 = arith.constant 5.000000e-01 : f32
    %6 = vector.broadcast %cst_3 : f32 to vector<2x8x128xf32>
    %7 = arith.addf %5, %6 : vector<2x8x128xf32>
    %c0_4 = arith.constant 0 : index
    %c0_5 = arith.constant 0 : index
    %c0_6 = arith.constant 0 : index
    %8 = vector.load %arg2[%c0_4, %c0_5, %c0_6] : memref<2x8x128xf32, #tpu.memory_space<vmem>>, vector<2x8x128xf32>
    %9 = arith.mulf %7, %8 : vector<2x8x128xf32>
    %cst_7 = arith.constant dense<0.000000e+00> : vector<2x128xf32>
    %10 = vector.multi_reduction <add>, %9, %cst_7 [1] : vector<2x8x128xf32> to vector<2x128xf32>
    %cst_8 = arith.constant dense<0.000000e+00> : vector<2xf32>
    %11 = vector.multi_reduction <add>, %10, %cst_8 [1] : vector<2x128xf32> to vector<2xf32>
    %12 = vector.shape_cast %11 : vector<2xf32> to vector<2x1xf32>
    %13 = arith.addf %7, %8 : vector<2x8x128xf32>
    %cst_9 = arith.constant dense<0.000000e+00> : vector<2x128xf32>
    %14 = vector.multi_reduction <add>, %13, %cst_9 [1] : vector<2x8x128xf32> to vector<2x128xf32>
    %cst_10 = arith.constant dense<0.000000e+00> : vector<2xf32>
    %15 = vector.multi_reduction <add>, %14, %cst_10 [1] : vector<2x128xf32> to vector<2xf32>
    %16 = vector.shape_cast %15 : vector<2xf32> to vector<2x1xf32>
    %cst_11 = arith.constant 2.000000e+00 : f32
    %17 = vector.broadcast %cst_11 : f32 to vector<2x1xf32>
    %18 = arith.mulf %17, %12 : vector<2x1xf32>
    %cst_12 = arith.constant 9.99999993E-9 : f32
    %19 = vector.broadcast %cst_12 : f32 to vector<2x1xf32>
    %20 = arith.addf %16, %19 : vector<2x1xf32>
    %21 = arith.divf %18, %20 : vector<2x1xf32>
    %22 = vector.shape_cast %21 : vector<2x1xf32> to vector<1x2x1xf32>
    %23 = vector.shape_cast %22 : vector<1x2x1xf32> to vector<1x2x1xf32>
    %24 = vector.broadcast %23 : vector<1x2x1xf32> to vector<1x2x128xf32>
    %c0_13 = arith.constant 0 : index
    %c0_14 = arith.constant 0 : index
    %c0_15 = arith.constant 0 : index
    %25 = vector.load %arg3[%c0_13, %c0_14, %c0_15] : memref<1x2x128xf32, #tpu.memory_space<vmem>>, vector<1x2x128xf32>
    tpu.vector_store %arg3[%c0_13, %c0_14, %c0_15], %24 {strides = array<i32>} : memref<1x2x128xf32, #tpu.memory_space<vmem>>, vector<1x2x128xf32>,
    return
  }
  func.func @transform_0(%arg0: i32) -> (i32, i32, i32) {
    %c0_i32 = arith.constant 0 : i32
    %c0_i32_0 = arith.constant 0 : i32
    %c0_i32_1 = arith.constant 0 : i32
    return %arg0, %c0_i32, %c0_i32_0 : i32, i32, i32
  }
  func.func @transform_1(%arg0: i32) -> (i32, i32, i32) {
    %c0_i32 = arith.constant 0 : i32
    %c0_i32_0 = arith.constant 0 : i32
    %c0_i32_1 = arith.constant 0 : i32
    return %arg0, %c0_i32, %c0_i32_0 : i32, i32, i32
  }
  func.func @transform_2(%arg0: i32) -> (i32, i32, i32) {
    %c0_i32 = arith.constant 0 : i32
    %c0_i32_0 = arith.constant 0 : i32
    %c0_i32_1 = arith.constant 0 : i32
    return %arg0, %c0_i32, %c0_i32_0 : i32, i32, i32
  }
}

</mosaic_0001>

<bundles_post_ra>
// kernel: tpu_custom_call.1
= control target key start
LH: loop header
LB: loop body
LE: loop exit
PB: predicated region body
PF: predicated region fallthrough
CT: control target
= control target key end

     0   :  { %7 = vsyncpa [#allocation3], 0  ;;  %s254_s0 = inlined_call_operand.hbm [shape: f32[2,8,128], index: 0, kind: input, shape index: {}]   ;;  %s255_s1 = inlined_call_operand.hbm [shape: f32[2,8,128], index: 1, kind: input, shape index: {}]   ;;  %s256_s2 = inlined_call_operand.hbm [shape: f32[1,2,128], index: 2, kind: output, shape index: {}]  }
   0x1   :  { %8 = vsyncpa [#allocation6], 0 }
   0x2   :  { %9 = vsyncpa [#allocation4], 0  ;;  %s14_s11 = sshll.u32 %s254_s0, 4  ;;  %s225_s12 = smov [#allocation2]   ;;  %s15_s11 = int_to_ptr.hbm [resolvable:$true] %s14_s11 }
   0x3   :  { %s16_s13 = sshll.u32 %s225_s12, 4  ;;  %s27_s16 = sshll.u32 %s255_s1, 4  ;;  %s17_s13 = int_to_ptr.vmem [resolvable:$true] %s16_s13  ;;  %s28_s16 = int_to_ptr.hbm [resolvable:$true] %s27_s16 }
   0x4   :  { %s226_s17 = smov 128   ;;  %s227_s18 = smov 8  }
   0x5   :  { %22 = dma.hbm_to_vmem [thread:$0]  %s15_s11, 256, %s17_s13, [#allocation3], %s226_s17, %s226_s17, %s227_s18  }
   0x6   :  { %s228_s19 = smov [#allocation5]  }
   0x7   :  { %s29_s20 = sshll.u32 %s228_s19, 4  ;;  %s30_s20 = int_to_ptr.vmem [resolvable:$true] %s29_s20 }
   0x8   :  { %35 = dma.hbm_to_vmem [thread:$0]  %s28_s16, 256, %s30_s20, [#allocation6], %s226_s17, %s226_s17, %s227_s18  }
   0x9   :  { %219 = dma.done.wait [#allocation3], 256  }
   0xa   :  { %220 = vsyncadd [#allocation3], 4294967040 }
   0xb   :  { %221 = dma.done.wait [#allocation6], 256  }
   0xc   :  { %222 = vsyncadd [#allocation6], 4294967040  ;;  %v44_v0 = vld [vmem:[#allocation2] sm:$0xff]  ;;  %v45_v1 = vld [vmem:[#allocation2 + $0x8] sm:$0xff]  ;;  %vm72_vm0 = vcmask 1041409   ;;  %vm75_vm1 = vcmask 1041408  }
   0xd   :  { %v46_v2 = vmul.f32 0.5, %v44_v0  ;;  %v47_v3 = vmul.f32 0.5, %v45_v1  ;;  %v54_v8 = vld [vmem:[#allocation5] sm:$0xff]  ;;  %v55_v10 = vld [vmem:[#allocation5 + $0x8] sm:$0xff]  ;;  %s229_s0 = smov [#allocation7]   ;;  %s125_s23 = sshll.u32 %s256_s2, 4  ;;  %s126_s23 = int_to_ptr.hbm [resolvable:$true] %s125_s23 }
   0xe   :  { %s123_s1 = sshll.u32 %s229_s0, 4  ;;  %s124_s1 = int_to_ptr.vmem [resolvable:$true] %s123_s1 }
   0xf   :  { %141 = vtanh.f32 %v46_v2 }
  0x10   :  { %143 = vtanh.f32 %v47_v3 }
  0x15   :  { %v142_v4 = vpop.eup %141 }
  0x16   :  { %v144_v5 = vpop.eup %143  ;;  %v50_v6 = vmul.f32 0.5, %v142_v4 }
  0x17   :  { %v51_v7 = vmul.f32 0.5, %v144_v5 }
  0x18   :  { %v52_v9 = vadd.f32 0.5, %v50_v6 }
  0x19   :  { %v53_v11 = vadd.f32 0.5, %v51_v7 }
  0x1a   :  { %v79_v12 = vadd.f32 %v54_v8, %v52_v9  ;;  %v56_v13 = vmul.f32 %v54_v8, %v52_v9 }
  0x1b   :  { %v80_v14 = vadd.f32 %v55_v10, %v53_v11  ;;  %v57_v15 = vmul.f32 %v55_v10, %v53_v11 }
  0x1c   :  { %v81_v16 = vrot.slane %v79_v12, 4  ;;  %v58_v17 = vrot.slane %v56_v13, 4 }
  0x1d   :  { %v87_v18 = vrot.slane %v80_v14, 4  ;;  %v64_v19 = vrot.slane %v57_v15, 4 }
  0x1e   :  { %v82_v20 = vadd.f32 %v81_v16, %v79_v12  ;;  %v59_v21 = vadd.f32 %v58_v17, %v56_v13 }
  0x1f   :  { %v88_v22 = vadd.f32 %v87_v18, %v80_v14  ;;  %v65_v23 = vadd.f32 %v64_v19, %v57_v15 }
  0x20   :  { %v83_v24 = vrot.slane %v82_v20, 2  ;;  %v60_v25 = vrot.slane %v59_v21, 2 }
  0x21   :  { %v89_v26 = vrot.slane %v88_v22, 2  ;;  %v66_v27 = vrot.slane %v65_v23, 2 }
  0x22   :  { %v84_v28 = vadd.f32 %v83_v24, %v82_v20  ;;  %v61_v29 = vadd.f32 %v60_v25, %v59_v21 }
  0x23   :  { %v90_v30 = vadd.f32 %v89_v26, %v88_v22  ;;  %v67_v31 = vadd.f32 %v66_v27, %v65_v23 }
  0x24   :  { %v85_v32 = vrot.slane %v84_v28, 1  ;;  %v62_v34 = vrot.slane %v61_v29, 1 }
  0x25   :  { %v91_v33 = vrot.slane %v90_v30, 1  ;;  %v68_v35 = vrot.slane %v67_v31, 1 }
  0x26   :  { %v86_v36 = vadd.f32 %v85_v32, %v84_v28  ;;  %v63_v39 = vadd.f32 %v62_v34, %v61_v29 }
  0x27   :  { %v92_v37 = vadd.f32 %v91_v33, %v90_v30  ;;  %v69_v40 = vadd.f32 %v68_v35, %v67_v31 }
  0x29   :  { %v95_v38 = vsel %vm72_vm0, %v92_v37, %v86_v36  ;;  %v73_v42 = vsel %vm72_vm0, %v69_v40, %v63_v39 }
  0x2a   :  { %v97_v41 = vsel %vm75_vm1, %v95_v38, 0.0  ;;  %v76_v43 = vsel %vm75_vm1, %v73_v42, 0.0 }
  0x2b   :  { %98 = vadd.xlane.f32.xlu0 %v97_v41 }
  0x33   :  { %77 = vadd.xlane.f32.xlu0 %v76_v43 }
  0x9e   :  { %v99_v44 = vpop.xlane.xlu0 %98 }
  0x9f   :  { %v101_v45 = vadd.f32 1e-08, %v99_v44 }
  0xa1   :  { %145 = vrcp.f32 %v101_v45  ;;  %v113_v49 = vand.u32 2147483648, %v101_v45  ;;  %v111_v52 = vand.u32 2147483647, %v101_v45  ;;  %vm107_vm3 = vweird.f32 %v101_v45 }
  0xa3   :  { %v114_v55 = vor.u32 1.1754944e-38, %v113_v49  ;;  %vm112_vm5 = vcmp.eq.f32.partialorder %v111_v52, 8.507059e+37 }
  0xa6   :  { %v78_v50 = vpop.xlane.xlu0 %77 }
  0xa7   :  { %v146_v46 = vpop.eup %145  ;;  %v100_v54 = vmul.f32 2.0, %v78_v50 }
  0xa8   :  { %v103_v47 = vmul.f32 %v146_v46, %v101_v45  ;;  %vm108_vm2 = vweird.f32 %v146_v46 }
  0xa9   :  { %vm109_vm4 = vmor %vm107_vm3, %vm108_vm2 }
  0xaa   :  { %v104_v48 = vsub.f32 1.0, %v103_v47 }
  0xac   :  { %v105_v51 = vmul.f32 %v146_v46, %v104_v48 }
  0xae   :  { %v106_v53 = vadd.f32 %v146_v46, %v105_v51 }
  0xb0   :  { %v110_v56 = vsel %vm109_vm4, %v146_v46, %v106_v53 }
  0xb1   :  { %v115_v57 = vsel %vm112_vm5, %v114_v55, %v110_v56 }
  0xb2   :  { %v116_v58 = vmul.f32 %v115_v57, %v100_v54 }
  0xb4   :  { %117 = vst [vmem:[#allocation7] sm:$0x3] %v116_v58 }
  0xb5   :  { %128 = dma.vmem_to_hbm [thread:$0]  %s124_s1, 32, %s126_s23, [#allocation4]  }
  0xb6   :  { %223 = dma.done.wait [#allocation4], 32  }
  0xb7   :  { %224 = vsyncadd [#allocation4], 4294967264 }
  0xb8   :  { %133 = vsyncpa [#allocation3], 1 }
  0xb9   :  { %134 = vsyncpa [#allocation6], 1 }
  0xba   :  { %135 = vsyncpa [#allocation4], 1 }

</bundles_post_ra>
